<compile_context>
chip_gen: v7x
topology: tpu7x:2x2x1
jax: 0.10.0
libtpu: 0.0.40
codegen_flags: <defaults>
</compile_context>

<pallas_src>
import jax
import jax.numpy as jnp
from jax.experimental import pallas as pl
from jax.experimental.pallas import tpu as pltpu

EPS = 1e-5
LEAKY_SLOPE = 0.01          # F.leaky_relu default negative_slope
NEG_PAD = -1e30             # bias padding for padded action lanes


def _round_up(x, m):
    return (x + m - 1) // m * m


def _cdiv(a, b):
    return -(-a // b)


def _make_actor_kernel(H1, H2, A, Ap, pack):
    """Build the fused actor kernel for static sizes H1, H2, A, Ap."""

    def fc_ln_lrelu(x, w_ref, b, g, beta):
        # Linear on the MXU: bf16 operands, f32 accumulation.
        h = jnp.dot(x, w_ref[...], preferred_element_type=jnp.float32) + b
        inv_h = 1.0 / float(h.shape[-1])
        # Two-pass LayerNorm (numerically safer than E[h^2]-E[h]^2), f32 math.
        m = jnp.sum(h, axis=-1, keepdims=True) * inv_h
        d = h - m
        v = jnp.sum(d * d, axis=-1, keepdims=True) * inv_h
        h = d * jax.lax.rsqrt(v + EPS) * g + beta
        h = jnp.maximum(h, LEAKY_SLOPE * h)          # leaky_relu, one max
        return h.astype(jnp.bfloat16)                # bf16 hand-off to next MXU call

    def kernel(obs_ref, w1_ref, w2_ref, w3_ref, p_ref, *out_refs):
        x = obs_ref[...]                              # bf16 (TB, S), BN already applied
        x = fc_ln_lrelu(x, w1_ref, p_ref[0:1, :H1], p_ref[1:2, :H1], p_ref[2:3, :H1])
        x = fc_ln_lrelu(x, w2_ref, p_ref[3:4, :H2], p_ref[4:5, :H2], p_ref[5:6, :H2])

        # fc3 -> logits (padded action lanes carry bias NEG_PAD, zero weights).
        logit = jnp.dot(x, w3_ref[...], preferred_element_type=jnp.float32) \
            + p_ref[6:7, :Ap]

        # log_softmax over the true A lanes; padded lanes underflow to 0 in exp.
        m = jnp.max(logit, axis=-1, keepdims=True)
        z = logit - m

        if pack:
            # Lanes [A:2A) hold a duplicate of the true logits (fc3 columns were
            # duplicated in the wrapper), so the packed output is built in place:
            #   lanes [0:A)  -> logit
            #   lanes [A:2A) -> z - lse  (== log_p of the duplicated logits)
            lane = jax.lax.broadcasted_iota(jnp.int32, z.shape, 1)
            valid = lane < A
            p = jnp.where(valid, jnp.exp(z), 0.0)     # mask duplicates & padding
            lse = jnp.log(jnp.sum(p, axis=-1, keepdims=True))
            out_refs[0][...] = jnp.where(valid, logit, z - lse)
        else:
            lse = jnp.log(jnp.sum(jnp.exp(z), axis=-1, keepdims=True))
            out_refs[0][...] = logit
            out_refs[1][...] = z - lse

    return kernel


def discrete_actor_forward(obs, params, *, batch_tile=1024):
    """obs: (B, state_size) f32 (or (state_size,)).  Returns (logit, log_p)."""
    obs = jnp.asarray(obs, jnp.float32)
    single = obs.ndim == 1
    if single:
        obs = obs[None, :]
    B, S = obs.shape
    H1 = params["w1"].shape[1]
    H2 = params["w2"].shape[1]
    A = params["w3"].shape[1]
    Ap = max(128, _round_up(A, 128))                  # keep at lane minimum
    pack = (2 * A) <= Ap

    # ---- train-mode BatchNorm1d over the FULL batch, applied here in f32 so
    # batch tiling inside the kernel cannot change BN semantics and the
    # potentially huge rsqrt(var) scale never touches bf16 weights.
    # TODO(synk): eval-mode BatchNorm (running-stat tracking/use) is not modeled;
    # this matches the PyTorch module in training mode with gamma=1, beta=0.
    mu = jnp.mean(obs, axis=0, keepdims=True)
    var = jnp.mean((obs - mu) ** 2, axis=0, keepdims=True)   # biased variance
    x_bn = (obs - mu) * jax.lax.rsqrt(var + EPS)             # f32 (B, S)

    # ---- bf16 streamed matmul operands (norm/softmax math stays f32 in-kernel).
    w1b = params["w1"].astype(jnp.bfloat16)
    w2b = params["w2"].astype(jnp.bfloat16)
    w3p = jnp.zeros((H2, Ap), jnp.float32).at[:, :A].set(params["w3"])
    b3row = jnp.full((Ap,), NEG_PAD, jnp.float32).at[:A].set(params["b3"].reshape(-1))
    if pack:
        # Duplicate fc3 columns into lanes [A:2A) -> kernel emits logit|log_p
        # as one lane-dense store.
        w3p = w3p.at[:, A:2 * A].set(params["w3"])
        b3row = b3row.at[A:2 * A].set(params["b3"].reshape(-1))
    w3b = w3p.astype(jnp.bfloat16)

    # ---- pack all (1, H) bias / LN params into one small VMEM-resident block.
    Hmax = max(H1, H2, Ap)

    def _row(v):
        v = jnp.asarray(v, jnp.float32).reshape(-1)
        return jnp.zeros((Hmax,), jnp.float32).at[: v.shape[0]].set(v)

    pblock = jnp.stack(
        [_row(params["b1"]), _row(params["ln1_g"]), _row(params["ln1_b"]),
         _row(params["b2"]), _row(params["ln2_g"]), _row(params["ln2_b"]),
         _row(b3row), jnp.zeros((Hmax,), jnp.float32)],
        axis=0)                                        # (8, Hmax) f32

    # ---- balanced batch tiles (multiple of 16 for bf16 sublanes); >=2 tiles
    # whenever B > batch_tile so both v7x TensorCores get work.
    n_tiles = max(1, _cdiv(B, max(16, batch_tile)))
    TB = _round_up(_cdiv(B, n_tiles), 16)
    Bp = TB * n_tiles
    obs_b = jnp.zeros((Bp, S), jnp.bfloat16).at[:B].set(x_bn.astype(jnp.bfloat16))

    kernel = _make_actor_kernel(H1, H2, A, Ap, pack)

    def row_spec(shape):              # batch-tiled arrays
        return pl.BlockSpec(shape, lambda i: (i, 0))

    def rep_spec(shape):              # VMEM-resident (same block every step)
        return pl.BlockSpec(shape, lambda i: (0, 0))

    if pack:
        out_shape = jax.ShapeDtypeStruct((Bp, Ap), jnp.float32)
        out_specs = row_spec((TB, Ap))
    else:
        out_shape = (jax.ShapeDtypeStruct((Bp, Ap), jnp.float32),
                     jax.ShapeDtypeStruct((Bp, Ap), jnp.float32))
        out_specs = (row_spec((TB, Ap)), row_spec((TB, Ap)))

    out = pl.pallas_call(
        kernel,
        out_shape=out_shape,
        grid=(n_tiles,),
        in_specs=[
            row_spec((TB, S)),
            rep_spec((S, H1)), rep_spec((H1, H2)), rep_spec((H2, Ap)),
            rep_spec((8, Hmax)),
        ],
        out_specs=out_specs,
        compiler_params=pltpu.CompilerParams(
            dimension_semantics=("parallel",),
            vmem_limit_bytes=48 * 1024 * 1024,
        ),
    )(obs_b, w1b, w2b, w3b, pblock)

    if pack:
        logit, logp = out[:B, :A], out[:B, A:2 * A]
    else:
        logit, logp = out[0][:B, :A], out[1][:B, :A]
    if single:
        logit, logp = logit[0], logp[0]
    return logit, logp


def init_params(key, state_size, action_size, fc_units=(256, 256)):
    """Parameter init mimicking the PyTorch module's init scheme (f32 master copy)."""
    h1, h2 = fc_units
    ks = jax.random.split(key, 6)

    def uniform(k, shape, lim):
        return jax.random.uniform(k, shape, jnp.float32, -lim, lim)

    # reset_parameters(): fc1/fc2 weights uniform(-1/sqrt(fan_in), ...) with
    # fan_in = weight.size(0) = out_features (as written in hidden_init),
    # fc3 weight uniform(-3e-3, 3e-3). Biases keep PyTorch Linear default
    # uniform(-1/sqrt(in_features), +1/sqrt(in_features)).
    # Weights stored transposed: (in, out).
    w1 = uniform(ks[0], (state_size, h1), 1.0 / jnp.sqrt(h1))
    b1 = uniform(ks[1], (1, h1), 1.0 / jnp.sqrt(state_size))
    w2 = uniform(ks[2], (h1, h2), 1.0 / jnp.sqrt(h2))
    b2 = uniform(ks[3], (1, h2), 1.0 / jnp.sqrt(h1))
    w3 = uniform(ks[4], (h2, action_size), 0.003)
    b3 = uniform(ks[5], (1, action_size), 1.0 / jnp.sqrt(h2))

    return dict(
        w1=w1, b1=b1,
        ln1_g=jnp.ones((1, h1), jnp.float32), ln1_b=jnp.zeros((1, h1), jnp.float32),
        w2=w2, b2=b2,
        ln2_g=jnp.ones((1, h2), jnp.float32), ln2_b=jnp.zeros((1, h2), jnp.float32),
        w3=w3, b3=b3,
    )


def _reference_forward(obs, params):
    """Pure-JAX f32 reference matching the PyTorch forward (train-mode BN)."""
    mu = jnp.mean(obs, axis=0, keepdims=True)
    var = jnp.mean((obs - mu) ** 2, axis=0, keepdims=True)
    x = (obs - mu) * jax.lax.rsqrt(var + EPS)

    def layer(h, w, b, g, bet):
        h = h @ w + b
        m = jnp.mean(h, axis=-1, keepdims=True)
        v = jnp.mean((h - m) ** 2, axis=-1, keepdims=True)
        h = (h - m) * jax.lax.rsqrt(v + EPS) * g + bet
        return jnp.where(h >= 0, h, LEAKY_SLOPE * h)

    x = layer(x, params["w1"], params["b1"], params["ln1_g"], params["ln1_b"])
    x = layer(x, params["w2"], params["b2"], params["ln2_g"], params["ln2_b"])
    logit = x @ params["w3"] + params["b3"]
    logp = jax.nn.log_softmax(logit, axis=-1)
    return logit, logp


if __name__ == "__main__":
    key = jax.random.PRNGKey(0)
    k_obs, k_params = jax.random.split(key)

    batch = 8
    state_size = 32
    action_size = 16
    fc_units = (256, 256)

    obs = jax.random.normal(k_obs, (batch, state_size), jnp.float32)
    params = init_params(k_params, state_size, action_size, fc_units)

    logit, log_p = discrete_actor_forward(obs, params)
    jax.block_until_ready((logit, log_p))

    assert logit.shape == (batch, action_size)
    assert log_p.shape == (batch, action_size)
    # log_softmax sanity: each row's probabilities sum to ~1
    assert jnp.allclose(jnp.sum(jnp.exp(log_p), axis=-1), 1.0, atol=1e-4)

    # Loose check vs. f32 pure-JAX reference (kernel streams bf16 operands).
    logit_ref, logp_ref = _reference_forward(obs, params)
    assert jnp.allclose(logit, logit_ref, atol=5e-2), float(jnp.max(jnp.abs(logit - logit_ref)))
    assert jnp.allclose(log_p, logp_ref, atol=5e-2), float(jnp.max(jnp.abs(log_p - logp_ref)))

    print("KERNEL_OK")
</pallas_src>

<mosaic_0001>
module attributes {stable_mosaic.version = 11 : i64} {
  func.func @kernel(%arg0: i32, %arg1: memref<16x32xbf16, #tpu.memory_space<vmem>>, %arg2: memref<32x256xbf16, #tpu.memory_space<vmem>>, %arg3: memref<256x256xbf16, #tpu.memory_space<vmem>>, %arg4: memref<256x128xbf16, #tpu.memory_space<vmem>>, %arg5: memref<8x256xf32, #tpu.memory_space<vmem>>, %arg6: memref<16x128xf32, #tpu.memory_space<vmem>>) attributes {dimension_semantics = [#tpu.dimension_semantics<parallel>], iteration_bounds = array<i64: 1>, scalar_prefetch = 0 : i64, scratch_operands = 0 : i64, tpu.core_type = #tpu.core_type<tc>, window_params = [{transform_indices = @transform_0, window_bounds = array<i64: 16, 32>}, {pipeline_mode = #tpu.pipeline_mode<synchronous>, transform_indices = @transform_1, window_bounds = array<i64: 32, 256>}, {pipeline_mode = #tpu.pipeline_mode<synchronous>, transform_indices = @transform_2, window_bounds = array<i64: 256, 256>}, {pipeline_mode = #tpu.pipeline_mode<synchronous>, transform_indices = @transform_3, window_bounds = array<i64: 256, 128>}, {pipeline_mode = #tpu.pipeline_mode<synchronous>, transform_indices = @transform_4, window_bounds = array<i64: 8, 256>}, {transform_indices = @transform_5, window_bounds = array<i64: 16, 128>}]} {
    %c0 = arith.constant 0 : index
    %c0_0 = arith.constant 0 : index
    %0 = vector.load %arg1[%c0, %c0_0] : memref<16x32xbf16, #tpu.memory_space<vmem>>, vector<16x32xbf16>
    %c0_1 = arith.constant 0 : index
    %c0_2 = arith.constant 0 : index
    %1 = vector.load %arg5[%c0_1, %c0_2] : memref<8x256xf32, #tpu.memory_space<vmem>>, vector<1x256xf32>
    %c1 = arith.constant 1 : index
    %c0_3 = arith.constant 0 : index
    %2 = vector.load %arg5[%c1, %c0_3] : memref<8x256xf32, #tpu.memory_space<vmem>>, vector<1x256xf32>
    %c2 = arith.constant 2 : index
    %c0_4 = arith.constant 0 : index
    %3 = vector.load %arg5[%c2, %c0_4] : memref<8x256xf32, #tpu.memory_space<vmem>>, vector<1x256xf32>
    %c0_5 = arith.constant 0 : index
    %c0_6 = arith.constant 0 : index
    %4 = vector.load %arg2[%c0_5, %c0_6] : memref<32x256xbf16, #tpu.memory_space<vmem>>, vector<32x256xbf16>
    %cst = arith.constant dense<0.000000e+00> : vector<16x256xf32>
    %5 = tpu.matmul %0, %4, %cst {dimension_numbers = #tpu.dot_dimension_numbers<[1], [0], [0], [1], [0, 0, 1, 1], [], []>} : vector<16x32xbf16>, vector<32x256xbf16>, vector<16x256xf32> -> vector<16x256xf32>
    %6 = vector.broadcast %1 : vector<1x256xf32> to vector<16x256xf32>
    %7 = arith.addf %5, %6 : vector<16x256xf32>
    %cst_7 = arith.constant dense<0.000000e+00> : vector<16xf32>
    %8 = vector.multi_reduction <add>, %7, %cst_7 [1] : vector<16x256xf32> to vector<16xf32>
    %9 = vector.shape_cast %8 : vector<16xf32> to vector<16x1xf32>
    %cst_8 = arith.constant 3.906250e-03 : f32
    %10 = vector.broadcast %cst_8 : f32 to vector<16x1xf32>
    %11 = arith.mulf %9, %10 : vector<16x1xf32>
    %12 = vector.broadcast %11 : vector<16x1xf32> to vector<16x256xf32>
    %13 = arith.subf %7, %12 : vector<16x256xf32>
    %14 = arith.mulf %13, %13 : vector<16x256xf32>
    %cst_9 = arith.constant dense<0.000000e+00> : vector<16xf32>
    %15 = vector.multi_reduction <add>, %14, %cst_9 [1] : vector<16x256xf32> to vector<16xf32>
    %16 = vector.shape_cast %15 : vector<16xf32> to vector<16x1xf32>
    %cst_10 = arith.constant 3.906250e-03 : f32
    %17 = vector.broadcast %cst_10 : f32 to vector<16x1xf32>
    %18 = arith.mulf %16, %17 : vector<16x1xf32>
    %cst_11 = arith.constant 9.99999974E-6 : f32
    %19 = vector.broadcast %cst_11 : f32 to vector<16x1xf32>
    %20 = arith.addf %18, %19 : vector<16x1xf32>
    %21 = math.rsqrt %20 : vector<16x1xf32>
    %22 = vector.broadcast %21 : vector<16x1xf32> to vector<16x256xf32>
    %23 = arith.mulf %13, %22 : vector<16x256xf32>
    %24 = vector.broadcast %2 : vector<1x256xf32> to vector<16x256xf32>
    %25 = arith.mulf %23, %24 : vector<16x256xf32>
    %26 = vector.broadcast %3 : vector<1x256xf32> to vector<16x256xf32>
    %27 = arith.addf %25, %26 : vector<16x256xf32>
    %cst_12 = arith.constant 0.00999999977 : f32
    %28 = vector.broadcast %cst_12 : f32 to vector<16x256xf32>
    %29 = arith.mulf %28, %27 : vector<16x256xf32>
    %30 = arith.maximumf %27, %29 : vector<16x256xf32>
    %31 = arith.truncf %30 : vector<16x256xf32> to vector<16x256xbf16>
    %c3 = arith.constant 3 : index
    %c0_13 = arith.constant 0 : index
    %32 = vector.load %arg5[%c3, %c0_13] : memref<8x256xf32, #tpu.memory_space<vmem>>, vector<1x256xf32>
    %c4 = arith.constant 4 : index
    %c0_14 = arith.constant 0 : index
    %33 = vector.load %arg5[%c4, %c0_14] : memref<8x256xf32, #tpu.memory_space<vmem>>, vector<1x256xf32>
    %c5 = arith.constant 5 : index
    %c0_15 = arith.constant 0 : index
    %34 = vector.load %arg5[%c5, %c0_15] : memref<8x256xf32, #tpu.memory_space<vmem>>, vector<1x256xf32>
    %c0_16 = arith.constant 0 : index
    %c0_17 = arith.constant 0 : index
    %35 = vector.load %arg3[%c0_16, %c0_17] : memref<256x256xbf16, #tpu.memory_space<vmem>>, vector<256x256xbf16>
    %cst_18 = arith.constant dense<0.000000e+00> : vector<16x256xf32>
    %36 = tpu.matmul %31, %35, %cst_18 {dimension_numbers = #tpu.dot_dimension_numbers<[1], [0], [0], [1], [0, 0, 1, 1], [], []>} : vector<16x256xbf16>, vector<256x256xbf16>, vector<16x256xf32> -> vector<16x256xf32>
    %37 = vector.broadcast %32 : vector<1x256xf32> to vector<16x256xf32>
    %38 = arith.addf %36, %37 : vector<16x256xf32>
    %cst_19 = arith.constant dense<0.000000e+00> : vector<16xf32>
    %39 = vector.multi_reduction <add>, %38, %cst_19 [1] : vector<16x256xf32> to vector<16xf32>
    %40 = vector.shape_cast %39 : vector<16xf32> to vector<16x1xf32>
    %cst_20 = arith.constant 3.906250e-03 : f32
    %41 = vector.broadcast %cst_20 : f32 to vector<16x1xf32>
    %42 = arith.mulf %40, %41 : vector<16x1xf32>
    %43 = vector.broadcast %42 : vector<16x1xf32> to vector<16x256xf32>
    %44 = arith.subf %38, %43 : vector<16x256xf32>
    %45 = arith.mulf %44, %44 : vector<16x256xf32>
    %cst_21 = arith.constant dense<0.000000e+00> : vector<16xf32>
    %46 = vector.multi_reduction <add>, %45, %cst_21 [1] : vector<16x256xf32> to vector<16xf32>
    %47 = vector.shape_cast %46 : vector<16xf32> to vector<16x1xf32>
    %cst_22 = arith.constant 3.906250e-03 : f32
    %48 = vector.broadcast %cst_22 : f32 to vector<16x1xf32>
    %49 = arith.mulf %47, %48 : vector<16x1xf32>
    %cst_23 = arith.constant 9.99999974E-6 : f32
    %50 = vector.broadcast %cst_23 : f32 to vector<16x1xf32>
    %51 = arith.addf %49, %50 : vector<16x1xf32>
    %52 = math.rsqrt %51 : vector<16x1xf32>
    %53 = vector.broadcast %52 : vector<16x1xf32> to vector<16x256xf32>
    %54 = arith.mulf %44, %53 : vector<16x256xf32>
    %55 = vector.broadcast %33 : vector<1x256xf32> to vector<16x256xf32>
    %56 = arith.mulf %54, %55 : vector<16x256xf32>
    %57 = vector.broadcast %34 : vector<1x256xf32> to vector<16x256xf32>
    %58 = arith.addf %56, %57 : vector<16x256xf32>
    %cst_24 = arith.constant 0.00999999977 : f32
    %59 = vector.broadcast %cst_24 : f32 to vector<16x256xf32>
    %60 = arith.mulf %59, %58 : vector<16x256xf32>
    %61 = arith.maximumf %58, %60 : vector<16x256xf32>
    %62 = arith.truncf %61 : vector<16x256xf32> to vector<16x256xbf16>
    %c0_25 = arith.constant 0 : index
    %c0_26 = arith.constant 0 : index
    %63 = vector.load %arg4[%c0_25, %c0_26] : memref<256x128xbf16, #tpu.memory_space<vmem>>, vector<256x128xbf16>
    %cst_27 = arith.constant dense<0.000000e+00> : vector<16x128xf32>
    %64 = tpu.matmul %62, %63, %cst_27 {dimension_numbers = #tpu.dot_dimension_numbers<[1], [0], [0], [1], [0, 0, 1, 1], [], []>} : vector<16x256xbf16>, vector<256x128xbf16>, vector<16x128xf32> -> vector<16x128xf32>
    %c6 = arith.constant 6 : index
    %c0_28 = arith.constant 0 : index
    %65 = vector.load %arg5[%c6, %c0_28] : memref<8x256xf32, #tpu.memory_space<vmem>>, vector<1x128xf32>
    %66 = vector.broadcast %65 : vector<1x128xf32> to vector<16x128xf32>
    %67 = arith.addf %64, %66 : vector<16x128xf32>
    %cst_29 = arith.constant dense<0xFF800000> : vector<16xf32>
    %68 = vector.multi_reduction <maximumf>, %67, %cst_29 [1] : vector<16x128xf32> to vector<16xf32>
    %69 = vector.shape_cast %68 : vector<16xf32> to vector<16x1xf32>
    %70 = vector.broadcast %69 : vector<16x1xf32> to vector<16x128xf32>
    %71 = arith.subf %67, %70 : vector<16x128xf32>
    %72 = tpu.iota {dimensions = array<i32: 1>} : vector<16x128xi32>
    %c16_i32 = arith.constant 16 : i32
    %73 = vector.broadcast %c16_i32 : i32 to vector<16x128xi32>
    %74 = arith.cmpi slt, %72, %73 : vector<16x128xi32>
    %75 = math.exp %71 : vector<16x128xf32>
    %cst_30 = arith.constant 0.000000e+00 : f32
    %76 = vector.broadcast %cst_30 : f32 to vector<16x128xf32>
    %77 = arith.select %74, %75, %76 : vector<16x128xi1>, vector<16x128xf32>
    %cst_31 = arith.constant dense<0.000000e+00> : vector<16xf32>
    %78 = vector.multi_reduction <add>, %77, %cst_31 [1] : vector<16x128xf32> to vector<16xf32>
    %79 = vector.shape_cast %78 : vector<16xf32> to vector<16x1xf32>
    %80 = math.log %79 : vector<16x1xf32>
    %81 = vector.broadcast %80 : vector<16x1xf32> to vector<16x128xf32>
    %82 = arith.subf %71, %81 : vector<16x128xf32>
    %83 = arith.select %74, %67, %82 : vector<16x128xi1>, vector<16x128xf32>
    %c0_32 = arith.constant 0 : index
    %c0_33 = arith.constant 0 : index
    %84 = vector.load %arg6[%c0_32, %c0_33] : memref<16x128xf32, #tpu.memory_space<vmem>>, vector<16x128xf32>
    tpu.vector_store %arg6[%c0_32, %c0_33], %83 {strides = array<i32>} : memref<16x128xf32, #tpu.memory_space<vmem>>, vector<16x128xf32>,
    return
  }
  func.func @transform_0(%arg0: i32) -> (i32, i32) {
    %c0_i32 = arith.constant 0 : i32
    %c0_i32_0 = arith.constant 0 : i32
    return %arg0, %c0_i32 : i32, i32
  }
  func.func @transform_1(%arg0: i32) -> (i32, i32) {
    %c0_i32 = arith.constant 0 : i32
    %c0_i32_0 = arith.constant 0 : i32
    %c0_i32_1 = arith.constant 0 : i32
    return %c0_i32, %c0_i32_0 : i32, i32
  }
  func.func @transform_2(%arg0: i32) -> (i32, i32) {
    %c0_i32 = arith.constant 0 : i32
    %c0_i32_0 = arith.constant 0 : i32
    %c0_i32_1 = arith.constant 0 : i32
    return %c0_i32, %c0_i32_0 : i32, i32
  }
  func.func @transform_3(%arg0: i32) -> (i32, i32) {
    %c0_i32 = arith.constant 0 : i32
    %c0_i32_0 = arith.constant 0 : i32
    %c0_i32_1 = arith.constant 0 : i32
    return %c0_i32, %c0_i32_0 : i32, i32
  }
  func.func @transform_4(%arg0: i32) -> (i32, i32) {
    %c0_i32 = arith.constant 0 : i32
    %c0_i32_0 = arith.constant 0 : i32
    %c0_i32_1 = arith.constant 0 : i32
    return %c0_i32, %c0_i32_0 : i32, i32
  }
  func.func @transform_5(%arg0: i32) -> (i32, i32) {
    %c0_i32 = arith.constant 0 : i32
    %c0_i32_0 = arith.constant 0 : i32
    return %arg0, %c0_i32 : i32, i32
  }
}

</mosaic_0001>

<bundles_post_ra>
// kernel: tpu_custom_call.1
= control target key start
LH: loop header
LB: loop body
LE: loop exit
PB: predicated region body
PF: predicated region fallthrough
CT: control target
= control target key end

     0   :  { %10 = vsyncpa [#allocation3], 0  ;;  %s1254_s0 = inlined_call_operand.hbm [shape: bf16[16,32], index: 0, kind: input, shape index: {}]   ;;  %s1255_s1 = inlined_call_operand.hbm [shape: bf16[32,256], index: 1, kind: input, shape index: {}]   ;;  %s1256_s2 = inlined_call_operand.hbm [shape: bf16[256,256], index: 2, kind: input, shape index: {}]   ;;  %s1257_s3 = inlined_call_operand.hbm [shape: bf16[256,128], index: 3, kind: input, shape index: {}]   ;;  %s1258_s4 = inlined_call_operand.hbm [shape: f32[8,256], index: 4, kind: input, shape index: {}]   ;;  %s1259_s5 = inlined_call_operand.hbm [shape: f32[16,128], index: 5, kind: output, shape index: {}]  }
   0x1   :  { %11 = vsyncpa [#allocation6], 0 }
   0x2   :  { %12 = vsyncpa [#allocation9], 0 }
   0x3   :  { %13 = vsyncpa [#allocation4], 0  ;;  %s1110_s18 = smov [#allocation5]   ;;  %s970_s22 = scalar_lea.hbm %s1255_s1, 512 }
   0x4   :  { %s31_s19 = sshll.u32 %s1110_s18, 4  ;;  %p971_p0 = scmp.ne.s32.totalorder %s1255_s1, %s970_s22  ;;  %s32_s19 = int_to_ptr.vmem [resolvable:$true] %s31_s19 }
   0x5   :  { %p974_p1 = scmp.lt.u32.totalorder %s970_s22, %s1255_s1 }
   0x7   :  { %p976_p2 = pnand %p974_p1, %p971_p0 }
   0x9   :  { %979 = shalt.err (!%p976_p2)
}
   0xa   :  { %s980_s27 = scalar_lea.vmem %s32_s19, 512  ;;  %p985_p4 = scmp.lt.s32.totalorder %s32_s19, %s32_s19 }
   0xb   :  { %p981_p3 = scmp.ne.s32.totalorder %s32_s19, %s980_s27  ;;  %p986_p5 = scmp.lt.s32.totalorder %s980_s27, %s980_s27 }
   0xd   :  { %p987_p6 = por %p986_p5, %p985_p4 }
   0xf   :  { %p988_p7 = pnand %p987_p6, %p981_p3 }
  0x11   :  { %991 = shalt.err (!%p988_p7)
}
  0x12   :  { %s1111_s28 = smov 128   ;;  %s1112_s29 = smov 8  }
  0x13   :  { %37 = dma.hbm_to_vmem [thread:$0]  %s1255_s1, 512, %s32_s19, [#allocation6], %s1111_s28, %s1111_s28, %s1112_s29  }
  0x14   :  { %s1113_s7 = smov [#allocation8]   ;;  %s1114_s9 = smov [#allocation2]  }
  0x15   :  { %s55_s8 = sshll.u32 %s1113_s7, 4  ;;  %s19_s10 = sshll.u32 %s1114_s9, 4  ;;  %s56_s8 = int_to_ptr.vmem [resolvable:$true] %s55_s8  ;;  %s20_s10 = int_to_ptr.vmem [resolvable:$true] %s19_s10 }
  0x16   :  { %s992_s13 = scalar_lea.hbm %s1257_s3, 2048 }
  0x17   :  { %p993_p8 = scmp.ne.s32.totalorder %s1257_s3, %s992_s13  ;;  %p996_p9 = scmp.lt.u32.totalorder %s992_s13, %s1257_s3 }
  0x19   :  { %p998_p10 = pnand %p996_p9, %p993_p8 }
  0x1b   :  { %1001 = shalt.err (!%p998_p10)
}
  0x1c   :  { %s1002_s1 = scalar_lea.vmem %s56_s8, 2048  ;;  %p1007_p12 = scmp.lt.s32.totalorder %s56_s8, %s56_s8 }
  0x1d   :  { %p1003_p11 = scmp.ne.s32.totalorder %s56_s8, %s1002_s1  ;;  %p1008_p13 = scmp.lt.s32.totalorder %s1002_s1, %s1002_s1 }
  0x1f   :  { %p1009_p0 = por %p1008_p13, %p1007_p12 }
  0x21   :  { %p1010_p1 = pnand %p1009_p0, %p1003_p11 }
  0x23   :  { %1013 = shalt.err (!%p1010_p1)
}
  0x24   :  { %s1115_s18 = smov 64   ;;  %s1116_s19 = smov 4  }
  0x25   :  { %61 = dma.hbm_to_vmem [thread:$0]  %s1257_s3, 2048, %s56_s8, [#allocation9], %s1115_s18, %s1115_s18, %s1116_s19  }
  0x26   :  { %s1014_s24 = scalar_lea.hbm %s1254_s0, 128 }
  0x27   :  { %p1015_p2 = scmp.ne.s32.totalorder %s1254_s0, %s1014_s24  ;;  %p1018_p3 = scmp.lt.u32.totalorder %s1014_s24, %s1254_s0 }
  0x29   :  { %p1020_p4 = pnand %p1018_p3, %p1015_p2 }
  0x2b   :  { %1023 = shalt.err (!%p1020_p4)
}
  0x2c   :  { %s1024_s6 = scalar_lea.vmem %s20_s10, 128  ;;  %p1029_p6 = scmp.lt.s32.totalorder %s20_s10, %s20_s10 }
  0x2d   :  { %p1025_p5 = scmp.ne.s32.totalorder %s20_s10, %s1024_s6  ;;  %p1030_p7 = scmp.lt.s32.totalorder %s1024_s6, %s1024_s6 }
  0x2f   :  { %p1031_p8 = por %p1030_p7, %p1029_p6 }
  0x31   :  { %p1032_p9 = pnand %p1031_p8, %p1025_p5 }
  0x33   :  { %1035 = shalt.err (!%p1032_p9)
}
  0x34   :  { %25 = dma.hbm_to_vmem [thread:$0]  %s1254_s0, 128, %s20_s10, [#allocation3], %s1115_s18, %s1115_s18, %s1116_s19  }
  0x35   :  { %s1117_s8 = smov [#allocation7]   ;;  %s1118_s11 = smov [#allocation10]  }
  0x36   :  { %s43_s9 = sshll.u32 %s1117_s8, 4  ;;  %s68_s12 = sshll.u32 %s1118_s11, 4  ;;  %s44_s9 = int_to_ptr.vmem [resolvable:$true] %s43_s9  ;;  %s69_s12 = int_to_ptr.vmem [resolvable:$true] %s68_s12 }
  0x37   :  { %s1036_s15 = scalar_lea.hbm %s1256_s2, 4096 }
  0x38   :  { %p1037_p10 = scmp.ne.s32.totalorder %s1256_s2, %s1036_s15  ;;  %p1040_p11 = scmp.lt.u32.totalorder %s1036_s15, %s1256_s2 }
  0x3a   :  { %p1042_p12 = pnand %p1040_p11, %p1037_p10 }
  0x3c   :  { %1045 = shalt.err (!%p1042_p12)
}
  0x3d   :  { %s1046_s0 = scalar_lea.vmem %s44_s9, 4096  ;;  %p1051_p0 = scmp.lt.s32.totalorder %s44_s9, %s44_s9 }
  0x3e   :  { %p1047_p13 = scmp.ne.s32.totalorder %s44_s9, %s1046_s0  ;;  %p1052_p1 = scmp.lt.s32.totalorder %s1046_s0, %s1046_s0 }
  0x40   :  { %p1053_p2 = por %p1052_p1, %p1051_p0 }
  0x42   :  { %p1054_p3 = pnand %p1053_p2, %p1047_p13 }
  0x44   :  { %1057 = shalt.err (!%p1054_p3)
}
  0x45   :  { %49 = dma.hbm_to_vmem [thread:$0]  %s1256_s2, 4096, %s44_s9, [#allocation6], %s1111_s28, %s1111_s28, %s1112_s29  }
  0x46   :  { %s1058_s22 = scalar_lea.hbm %s1258_s4, 256 }
  0x47   :  { %p1059_p4 = scmp.ne.s32.totalorder %s1258_s4, %s1058_s22  ;;  %p1062_p5 = scmp.lt.u32.totalorder %s1058_s22, %s1258_s4 }
  0x49   :  { %p1064_p6 = pnand %p1062_p5, %p1059_p4 }
  0x4b   :  { %1067 = shalt.err (!%p1064_p6)
}
  0x4c   :  { %s1068_s27 = scalar_lea.vmem %s69_s12, 256  ;;  %p1073_p8 = scmp.lt.s32.totalorder %s69_s12, %s69_s12 }
  0x4d   :  { %p1069_p7 = scmp.ne.s32.totalorder %s69_s12, %s1068_s27  ;;  %p1074_p9 = scmp.lt.s32.totalorder %s1068_s27, %s1068_s27 }
  0x4f   :  { %p1075_p10 = por %p1074_p9, %p1073_p8 }
  0x51   :  { %p1076_p11 = pnand %p1075_p10, %p1069_p7 }
  0x53   :  { %1079 = shalt.err (!%p1076_p11)
}
  0x54   :  { %71 = dma.hbm_to_vmem [thread:$0]  %s1258_s4, 256, %s69_s12, [#allocation9]  }
  0x55   :  { %1102 = dma.done.wait [#allocation3], 128  }
  0x56   :  { %1103 = vsyncadd [#allocation3], 4294967168 }
  0x57   :  { %1104 = dma.done.wait [#allocation6], 4608  }
  0x58   :  { %1105 = vsyncadd [#allocation6], 4294962688 }
  0x59   :  { %1106 = dma.done.wait [#allocation9], 2304  }
  0x5a   :  { %1107 = vsyncadd [#allocation9], 4294964992  ;;  %v1119_v0 = vmov 0   ;;  %v883_v1 = vld [vmem:[#allocation5 + $0x4] ss:$8 sps:$4 sm:$0xff]   ;;  %v889_v5 = vld [vmem:[#allocation2] sm:$0xff]   ;;  %v100_v6 = vlaneseq }
  0x5b   :  { %171 = vmatprep.mubr.bf16.mxu0 %v1119_v0  ;;  %v885_v2 = vld [vmem:[#allocation5] ss:$8 sps:$4 sm:$0xff]   ;;  %139 = vmatprep.subr.bf16.mxu0 %v883_v1  ;;  %v886_v3 = vld [vmem:[#allocation5 + $0x14] ss:$8 sps:$4 sm:$0xff]   ;;  %v888_v4 = vld [vmem:[#allocation5 + $0x10] ss:$8 sps:$4 sm:$0xff]  }
  0x5c   :  { %140 = vmatpush1.bf16.msra.mxu0 %v885_v2  ;;  %vm135_vm0 = vcmask 261120   ;;  %v101_v7 = vshrl.u32 %v100_v6, 7  ;;  %v90_v9 = vld [vmem:[#allocation10] ss:$8 sm:$0x3]  ;;  %s1120_s4 = smov [#allocation11]  }
  0x5d   :  { %141 = vmatprep.subr.bf16.mxu0 %v886_v3  ;;  %v890_v23 = vld [vmem:[#allocation7 + $0x4] ss:$8 sps:$4 sm:$0xff]   ;;  %v892_v24 = vld [vmem:[#allocation7] ss:$8 sps:$4 sm:$0xff]   ;;  %v893_v25 = vld [vmem:[#allocation7 + $0x14] ss:$8 sps:$4 sm:$0xff]  }
  0x5e   :  { %v1218_v8 = vsub.s32 0, %v101_v7  ;;  %v1220_v10 = vsub.s32 1, %v101_v7  ;;  %463 = vmatprep.subr.bf16.mxu1 %v890_v23  ;;  %v895_v26 = vld [vmem:[#allocation7 + $0x10] ss:$8 sps:$4 sm:$0xff]   ;;  %v896_v27 = vld [vmem:[#allocation7 + $0x24] ss:$8 sps:$4 sm:$0xff]  }
  0x5f   :  { %464 = vmatpush1.bf16.msra.mxu1 %v892_v24  ;;  %v898_v28 = vld [vmem:[#allocation7 + $0x20] ss:$8 sps:$4 sm:$0xff]   ;;  %v899_v29 = vld [vmem:[#allocation7 + $0x34] ss:$8 sps:$4 sm:$0xff]   ;;  %v901_v30 = vld [vmem:[#allocation7 + $0x30] ss:$8 sps:$4 sm:$0xff]  }
  0x60   :  { %142 = vmatpush1.bf16.msra.mxu0 %v888_v4  ;;  %v103_v11 = vrot.slane %v90_v9, %v1218_v8  ;;  %v107_v12 = vrot.slane %v90_v9, %v1220_v10  ;;  %465 = vmatprep.subr.bf16.mxu1 %v893_v25  ;;  %v902_v31 = vld [vmem:[#allocation7 + $0x44] ss:$8 sps:$4 sm:$0xff]   ;;  %v904_v32 = vld [vmem:[#allocation7 + $0x40] ss:$8 sps:$4 sm:$0xff]   ;;  %v905_v33 = vld [vmem:[#allocation7 + $0x54] ss:$8 sps:$4 sm:$0xff]  }
  0x61   :  { %v907_v34 = vld [vmem:[#allocation7 + $0x50] ss:$8 sps:$4 sm:$0xff]   ;;  %v908_v35 = vld [vmem:[#allocation7 + $0x64] ss:$8 sps:$4 sm:$0xff]   ;;  %v910_v36 = vld [vmem:[#allocation7 + $0x60] ss:$8 sps:$4 sm:$0xff]  }
  0x62   :  { %v911_v37 = vld [vmem:[#allocation7 + $0x74] ss:$8 sps:$4 sm:$0xff]   ;;  %v913_v38 = vld [vmem:[#allocation7 + $0x70] ss:$8 sps:$4 sm:$0xff]   ;;  %v914_v53 = vld [vmem:[#allocation7 + $0x84] ss:$8 sps:$4 sm:$0xff]  }
  0x63   :  { %801 = vmatmul.mubr.msk.bf16.vlgmr.msra.gmra.mrb[0].mxu0 %vm135_vm0, %v889_v5  ;;  %466 = vmatpush1.bf16.msra.mxu1 %v895_v26  ;;  %v916_v54 = vld [vmem:[#allocation7 + $0x80] ss:$8 sps:$4 sm:$0xff]   ;;  %v917_v55 = vld [vmem:[#allocation7 + $0x94] ss:$8 sps:$4 sm:$0xff]   ;;  %v919_v56 = vld [vmem:[#allocation7 + $0x90] ss:$8 sps:$4 sm:$0xff]  }
  0x64   :  { %467 = vmatprep.subr.bf16.mxu1 %v896_v27  ;;  %v920_v57 = vld [vmem:[#allocation7 + $0xa4] ss:$8 sps:$4 sm:$0xff]   ;;  %v922_v58 = vld [vmem:[#allocation7 + $0xa0] ss:$8 sps:$4 sm:$0xff]   ;;  %v923_v59 = vld [vmem:[#allocation7 + $0xb4] ss:$8 sps:$4 sm:$0xff]  }
  0x65   :  { %v925_v60 = vld [vmem:[#allocation7 + $0xb0] ss:$8 sps:$4 sm:$0xff]   ;;  %v926_v61 = vld [vmem:[#allocation7 + $0xc4] ss:$8 sps:$4 sm:$0xff]   ;;  %v928_v62 = vld [vmem:[#allocation7 + $0xc0] ss:$8 sps:$4 sm:$0xff]  }
  0x66   :  { %v929_v63 = vld [vmem:[#allocation7 + $0xd4] ss:$8 sps:$4 sm:$0xff]   ;;  %v931_v0 = vld [vmem:[#allocation7 + $0xd0] ss:$8 sps:$4 sm:$0xff]   ;;  %v932_v1 = vld [vmem:[#allocation7 + $0xe4] ss:$8 sps:$4 sm:$0xff]  }
  0x67   :  { %468 = vmatpush1.bf16.msra.mxu1 %v898_v28  ;;  %v934_v2 = vld [vmem:[#allocation7 + $0xe0] ss:$8 sps:$4 sm:$0xff]   ;;  %v935_v3 = vld [vmem:[#allocation7 + $0xf4] ss:$8 sps:$4 sm:$0xff]   ;;  %v937_v4 = vld [vmem:[#allocation7 + $0xf0] ss:$8 sps:$4 sm:$0xff]  }
  0x68   :  { %469 = vmatprep.subr.bf16.mxu1 %v899_v29  ;;  %s782_s6 = sshll.u32 %s1120_s4, 4  ;;  %s783_s6 = int_to_ptr.vmem [resolvable:$true] %s782_s6 }
  0x69   :  { %s1080_s3 = scalar_lea.vmem %s783_s6, 256  ;;  %p1085_p13 = scmp.lt.s32.totalorder %s783_s6, %s783_s6 }
  0x6a   :  { %p1081_p12 = scmp.ne.s32.totalorder %s783_s6, %s1080_s3  ;;  %p1086_p0 = scmp.lt.s32.totalorder %s1080_s3, %s1080_s3 }
  0x6b   :  { %470 = vmatpush1.bf16.msra.mxu1 %v901_v30 }
  0x6c   :  { %471 = vmatprep.subr.bf16.mxu1 %v902_v31  ;;  %p1087_p1 = por %p1086_p0, %p1085_p13 }
  0x6e   :  { %p1088_p2 = pnand %p1087_p1, %p1081_p12 }
  0x6f   :  { %472 = vmatpush1.bf16.msra.mxu1 %v904_v32 }
  0x70   :  { %473 = vmatprep.subr.bf16.mxu1 %v905_v33 }
  0x73   :  { %474 = vmatpush1.bf16.msra.mxu1 %v907_v34 }
  0x74   :  { %475 = vmatprep.subr.bf16.mxu1 %v908_v35 }
  0x77   :  { %476 = vmatpush1.bf16.msra.mxu1 %v910_v36 }
  0x78   :  { %477 = vmatprep.subr.bf16.mxu1 %v911_v37 }
  0x7b   :  { %478 = vmatpush1.bf16.msra.mxu1 %v913_v38 }
  0x7c   :  { %479 = vmatprep.subr.bf16.mxu1 %v914_v53 }
  0x7f   :  { %480 = vmatpush1.bf16.msra.mxu1 %v916_v54 }
  0x80   :  { %481 = vmatprep.subr.bf16.mxu1 %v917_v55 }
  0x83   :  { %482 = vmatpush1.bf16.msra.mxu1 %v919_v56 }
  0x84   :  { %483 = vmatprep.subr.bf16.mxu1 %v920_v57  ;;  %v938_v57 = vld [vmem:[#allocation8 + $0x40] sm:$0xff]  }
  0x85   :  { %850 = vmatprep.subr.bf16.mxu0 %v938_v57 }
  0x87   :  { %484 = vmatpush1.bf16.msra.mxu1 %v922_v58  ;;  %v939_v58 = vld [vmem:[#allocation8] sm:$0xff]  }
  0x88   :  { %485 = vmatprep.subr.bf16.mxu1 %v923_v59  ;;  %851 = vmatpush3.bf16.msra.mxu0 %v939_v58 }
  0x8b   :  { %486 = vmatpush1.bf16.msra.mxu1 %v925_v60 }
  0x8c   :  { %487 = vmatprep.subr.bf16.mxu1 %v926_v61 }
  0x8f   :  { %488 = vmatpush1.bf16.msra.mxu1 %v928_v62 }
  0x90   :  { %489 = vmatprep.subr.bf16.mxu1 %v929_v63 }
  0x93   :  { %490 = vmatpush1.bf16.msra.mxu1 %v931_v0 }
  0x94   :  { %491 = vmatprep.subr.bf16.mxu1 %v932_v1 }
  0x97   :  { %492 = vmatpush1.bf16.msra.mxu1 %v934_v2 }
  0x98   :  { %493 = vmatprep.subr.bf16.mxu1 %v935_v3 }
  0x9b   :  { %494 = vmatpush1.bf16.msra.mxu1 %v937_v4 }
 0x136   :  { %v173_v13 = vpop.f32.mrb[0].mxu0 }
 0x137   :  { %v174_v14 = vadd.f32 %v173_v13, %v103_v11  ;;  %v175_v15 = vpop.f32.mrb[1].mxu0 }
 0x138   :  { %v176_v16 = vadd.f32 %v175_v15, %v107_v12  ;;  %v177_v17 = vpop.f32.mrb[2].mxu0  ;;  %v94_v15 = vld [vmem:[#allocation10 + $0x2] ss:$8 sm:$0x3] }
 0x139   :  { %v179_v18 = vpop.f32.mrb[3].mxu0  ;;  %v178_v19 = vadd.f32 %v177_v17, %v103_v11 }
 0x13a   :  { %v180_v20 = vadd.f32 %v179_v18, %v107_v12  ;;  %v182_v21 = vadd.f32 %v176_v16, %v174_v14 }
 0x13c   :  { %183 = vadd.xlane.f32.xlu0 %v182_v21  ;;  %v185_v22 = vadd.f32 %v180_v20, %v178_v19  ;;  %v237_v21 = vrot.slane %v94_v15, %v1220_v10 }
 0x140   :  { %186 = vadd.xlane.f32.xlu0 %v185_v22 }
 0x1c9   :  { %v184_v39 = vpop.xlane.xlu0 %183 }
 0x1ca   :  { %v188_v40 = vmul.f32 0.00390625, %v184_v39 }
 0x1cc   :  { %v190_v41 = vsub.f32 %v174_v14, %v188_v40  ;;  %v191_v42 = vsub.f32 %v176_v16, %v188_v40  ;;  %v92_v14 = vld [vmem:[#allocation10 + $0x1] ss:$8 sm:$0x3] }
 0x1cd   :  { %v187_v43 = vpop.xlane.xlu0 %186  ;;  %v218_v16 = vrot.slane %v92_v14, %v1218_v8  ;;  %v222_v17 = vrot.slane %v92_v14, %v1220_v10  ;;  %v942_v14 = vld [vmem:[#allocation8 + $0x50] sm:$0xff]  }
 0x1ce   :  { %v189_v44 = vmul.f32 0.00390625, %v187_v43  ;;  %v194_v45 = vmul.f32 %v190_v41, %v190_v41  ;;  %v195_v46 = vmul.f32 %v191_v42, %v191_v42 }
 0x1d0   :  { %v192_v47 = vsub.f32 %v178_v19, %v189_v44  ;;  %v193_v48 = vsub.f32 %v180_v20, %v189_v44  ;;  %v198_v49 = vadd.f32 %v195_v46, %v194_v45  ;;  %v233_v20 = vrot.slane %v94_v15, %v1218_v8  ;;  %v255_v44 = vld [vmem:[#allocation10 + $0x3] ss:$8 sm:$0x3]  ;;  %v943_v15 = vld [vmem:[#allocation8 + $0x10] sm:$0xff]  }
 0x1d1   :  { %v296_v45 = vrot.slane %v255_v44, %v1218_v8  ;;  %v300_v46 = vrot.slane %v255_v44, %v1220_v10 }
 0x1d2   :  { %199 = vadd.xlane.f32.xlu1 %v198_v49  ;;  %v196_v50 = vmul.f32 %v192_v47, %v192_v47  ;;  %v197_v51 = vmul.f32 %v193_v48, %v193_v48 }
 0x1d4   :  { %v201_v52 = vadd.f32 %v197_v51, %v196_v50 }
 0x1d6   :  { %202 = vadd.xlane.f32.xlu1 %v201_v52 }
 0x25f   :  { %v200_v5 = vpop.xlane.xlu1 %199 }
 0x260   :  { %v204_v7 = vmul.f32 0.00390625, %v200_v5 }
 0x262   :  { %v206_v9 = vadd.f32 1e-05, %v204_v7 }
 0x263   :  { %v203_v11 = vpop.xlane.xlu1 %202 }
 0x264   :  { %954 = vrsqrt.f32 %v206_v9  ;;  %v205_v12 = vmul.f32 0.00390625, %v203_v11 }
 0x266   :  { %v207_v13 = vadd.f32 1e-05, %v205_v12  ;;  %v940_v12 = vld [vmem:[#allocation8 + $0x48] sm:$0xff]  }
 0x267   :  { %852 = vmatprep.subr.bf16.mxu0 %v940_v12 }
 0x268   :  { %956 = vrsqrt.f32 %v207_v13  ;;  %v941_v13 = vld [vmem:[#allocation8 + $0x8] sm:$0xff]  }
 0x269   :  { %853 = vmatpush3.bf16.msra.mxu0 %v941_v13 }
 0x26a   :  { %854 = vmatprep.subr.bf16.mxu0 %v942_v14  ;;  %v755_v14 = vand.u32 127, %v100_v6 }
 0x26c   :  { %vm756_vm1 = vcmp.lt.s32.totalorder %v755_v14, 16 }
 0x26d   :  { %855 = vmatpush3.bf16.msra.mxu0 %v943_v15 }
 0x26e   :  { %v955_v18 = vpop.eup %954 }
 0x26f   :  { %v211_v19 = vmul.f32 %v955_v18, %v191_v42  ;;  %v210_v22 = vmul.f32 %v955_v18, %v190_v41  ;;  %v946_v18 = vld [vmem:[#allocation8 + $0x60] sm:$0xff]  }
 0x271   :  { %v226_v23 = vmul.f32 %v222_v17, %v211_v19  ;;  %v225_v24 = vmul.f32 %v218_v16, %v210_v22  ;;  %v947_v19 = vld [vmem:[#allocation8 + $0x20] sm:$0xff]   ;;  %v950_v22 = vld [vmem:[#allocation8 + $0x70] sm:$0xff]  }
 0x272   :  { %v957_v25 = vpop.eup %956 }
 0x273   :  { %v213_v26 = vmul.f32 %v957_v25, %v193_v48  ;;  %v241_v27 = vadd.f32 %v237_v21, %v226_v23  ;;  %v212_v28 = vmul.f32 %v957_v25, %v192_v47  ;;  %v240_v29 = vadd.f32 %v233_v20, %v225_v24  ;;  %v951_v23 = vld [vmem:[#allocation8 + $0x30] sm:$0xff]   ;;  %v952_v24 = vld [vmem:[#allocation8 + $0x78] sm:$0xff]  }
 0x274   :  { %v953_v25 = vld [vmem:[#allocation8 + $0x38] sm:$0xff]  }
 0x275   :  { %v228_v30 = vmul.f32 %v222_v17, %v213_v26  ;;  %v227_v31 = vmul.f32 %v218_v16, %v212_v28  ;;  %v245_v33 = vmul.f32 0.01, %v241_v27  ;;  %v244_v35 = vmul.f32 0.01, %v240_v29  ;;  %v944_v16 = vld [vmem:[#allocation8 + $0x58] sm:$0xff]  }
 0x276   :  { %v945_v17 = vld [vmem:[#allocation8 + $0x18] sm:$0xff]   ;;  %856 = vmatprep.subr.bf16.mxu0 %v944_v16 }
 0x277   :  { %v243_v32 = vadd.f32 %v237_v21, %v228_v30  ;;  %v242_v34 = vadd.f32 %v233_v20, %v227_v31  ;;  %v249_v38 = vmax.f32 %v241_v27, %v245_v33  ;;  %v248_v40 = vmax.f32 %v240_v29, %v244_v35  ;;  %857 = vmatpush3.bf16.msra.mxu0 %v945_v17  ;;  %v948_v20 = vld [vmem:[#allocation8 + $0x68] sm:$0xff]  }
 0x278   :  { %858 = vmatprep.subr.bf16.mxu0 %v946_v18  ;;  %v949_v21 = vld [vmem:[#allocation8 + $0x28] sm:$0xff]  }
 0x279   :  { %v247_v36 = vmul.f32 0.01, %v243_v32  ;;  %v246_v37 = vmul.f32 0.01, %v242_v34 }
 0x27a   :  { %v259_v33 = vld [vmem:[#allocation10 + $0x5] ss:$8 sm:$0x3] }
 0x27b   :  { %v251_v39 = vmax.f32 %v243_v32, %v247_v36  ;;  %v250_v42 = vmax.f32 %v242_v34, %v246_v37  ;;  %859 = vmatpush3.bf16.msra.mxu0 %v947_v19  ;;  %v257_v32 = vld [vmem:[#allocation10 + $0x4] ss:$8 sm:$0x3] }
 0x27c   :  { %860 = vmatprep.subr.bf16.mxu0 %v948_v20  ;;  %v542_v34 = vrot.slane %v257_v32, %v1218_v8  ;;  %v546_v35 = vrot.slane %v257_v32, %v1220_v10 }
 0x27d   :  { %v253_v41 = vpack.c.bf16 %v251_v39, %v249_v38  ;;  %v252_v43 = vpack.c.bf16 %v250_v42, %v248_v40  ;;  %v557_v39 = vrot.slane %v259_v33, %v1218_v8  ;;  %v561_v40 = vrot.slane %v259_v33, %v1220_v10 }
 0x27f   :  { %495 = vmatprep.mubr.bf16.mxu1 %v253_v41  ;;  %861 = vmatpush3.bf16.msra.mxu0 %v949_v21 }
 0x280   :  { %496 = vmatmul.mubr.bf16.vlgmr.msra.gmra.mrb[0].mxu1 %v252_v43  ;;  %862 = vmatprep.subr.bf16.mxu0 %v950_v22 }
 0x283   :  { %863 = vmatpush3.bf16.msra.mxu0 %v951_v23 }
 0x284   :  { %864 = vmatprep.subr.bf16.mxu0 %v952_v24 }
 0x287   :  { %865 = vmatpush3.bf16.msra.mxu0 %v953_v25 }
 0x353   :  { %v497_v47 = vpop.f32.mrb[0].mxu1 }
 0x354   :  { %v498_v48 = vadd.f32 %v497_v47, %v296_v45  ;;  %v499_v49 = vpop.f32.mrb[1].mxu1 }
 0x355   :  { %v500_v50 = vadd.f32 %v499_v49, %v300_v46  ;;  %v501_v51 = vpop.f32.mrb[2].mxu1 }
 0x356   :  { %v502_v52 = vadd.f32 %v501_v51, %v296_v45  ;;  %v503_v53 = vpop.f32.mrb[3].mxu1 }
 0x357   :  { %v504_v54 = vadd.f32 %v503_v53, %v300_v46  ;;  %v506_v55 = vadd.f32 %v500_v50, %v498_v48 }
 0x359   :  { %507 = vadd.xlane.f32.xlu0 %v506_v55  ;;  %v509_v56 = vadd.f32 %v504_v54, %v502_v52 }
 0x35b   :  { %510 = vadd.xlane.f32.xlu1 %v509_v56 }
 0x3e6   :  { %v508_v59 = vpop.xlane.xlu0 %507 }
 0x3e7   :  { %v512_v60 = vmul.f32 0.00390625, %v508_v59 }
 0x3e8   :  { %v511_v61 = vpop.xlane.xlu1 %510 }
 0x3e9   :  { %v514_v62 = vsub.f32 %v498_v48, %v512_v60  ;;  %v515_v63 = vsub.f32 %v500_v50, %v512_v60  ;;  %v513_v0 = vmul.f32 0.00390625, %v511_v61  ;;  %v610_v61 = vld [vmem:[#allocation10 + $0x6] ss:$0 sm:$0xff] }
 0x3eb   :  { %v516_v1 = vsub.f32 %v502_v52, %v513_v0  ;;  %v517_v2 = vsub.f32 %v504_v54, %v513_v0  ;;  %v518_v3 = vmul.f32 %v514_v62, %v514_v62  ;;  %v519_v4 = vmul.f32 %v515_v63, %v515_v63 }
 0x3ed   :  { %v522_v5 = vadd.f32 %v519_v4, %v518_v3  ;;  %v520_v7 = vmul.f32 %v516_v1, %v516_v1  ;;  %v521_v9 = vmul.f32 %v517_v2, %v517_v2 }
 0x3ef   :  { %523 = vadd.xlane.f32.xlu0 %v522_v5  ;;  %v525_v11 = vadd.f32 %v521_v9, %v520_v7 }
 0x3f1   :  { %526 = vadd.xlane.f32.xlu1 %v525_v11 }
 0x47c   :  { %v524_v26 = vpop.xlane.xlu0 %523 }
 0x47d   :  { %v528_v27 = vmul.f32 0.00390625, %v524_v26 }
 0x47e   :  { %v527_v28 = vpop.xlane.xlu1 %526 }
 0x47f   :  { %v530_v29 = vadd.f32 1e-05, %v528_v27  ;;  %v529_v30 = vmul.f32 0.00390625, %v527_v28 }
 0x481   :  { %958 = vrsqrt.f32 %v530_v29  ;;  %v531_v31 = vadd.f32 1e-05, %v529_v30 }
 0x483   :  { %960 = vrsqrt.f32 %v531_v31 }
 0x48b   :  { %v959_v36 = vpop.eup %958 }
 0x48c   :  { %v534_v37 = vmul.f32 %v959_v36, %v514_v62  ;;  %v535_v38 = vmul.f32 %v959_v36, %v515_v63 }
 0x48d   :  { %v961_v42 = vpop.eup %960 }
 0x48e   :  { %v536_v41 = vmul.f32 %v961_v42, %v516_v1  ;;  %v537_v43 = vmul.f32 %v961_v42, %v517_v2  ;;  %v550_v44 = vmul.f32 %v546_v35, %v535_v38  ;;  %v549_v45 = vmul.f32 %v542_v34, %v534_v37 }
 0x490   :  { %v552_v46 = vmul.f32 %v546_v35, %v537_v43  ;;  %v565_v47 = vadd.f32 %v561_v40, %v550_v44  ;;  %v551_v48 = vmul.f32 %v542_v34, %v536_v41  ;;  %v564_v49 = vadd.f32 %v557_v39, %v549_v45 }
 0x492   :  { %v567_v50 = vadd.f32 %v561_v40, %v552_v46  ;;  %v569_v51 = vmul.f32 0.01, %v565_v47  ;;  %v566_v52 = vadd.f32 %v557_v39, %v551_v48  ;;  %v568_v53 = vmul.f32 0.01, %v564_v49 }
 0x494   :  { %v571_v54 = vmul.f32 0.01, %v567_v50  ;;  %v570_v55 = vmul.f32 0.01, %v566_v52  ;;  %v573_v56 = vmax.f32 %v565_v47, %v569_v51  ;;  %v572_v8 = vmax.f32 %v564_v49, %v568_v53 }
 0x496   :  { %v575_v57 = vmax.f32 %v567_v50, %v571_v54  ;;  %v574_v58 = vmax.f32 %v566_v52, %v570_v55 }
 0x498   :  { %v577_v10 = vpack.c.bf16 %v575_v57, %v573_v56  ;;  %v576_v59 = vpack.c.bf16 %v574_v58, %v572_v8 }
 0x49a   :  { %739 = vmatprep.mubr.bf16.mxu0 %v577_v10 }
 0x49b   :  { %740 = vmatmul.mubr.bf16.vlgmr.msra.gmra.mrb[4].mxu0 %v576_v59 }
 0x56e   :  { %v866_v60 = vpop.f32.mrb[4].mxu0 }
 0x56f   :  { %v867_v62 = vpop.f32.mrb[5].mxu0 }
 0x570   :  { %v868_v63 = vadd.f32 %v867_v62, %v866_v60  ;;  %v869_v0 = vpop.f32.mrb[6].mxu0 }
 0x571   :  { %v870_v1 = vpop.f32.mrb[7].mxu0 }
 0x572   :  { %v742_v2 = vadd.f32 %v868_v63, %v610_v61  ;;  %v871_v3 = vadd.f32 %v870_v1, %v869_v0 }
 0x574   :  { %v745_v4 = vadd.f32 %v871_v3, %v610_v61  ;;  %748 = vmax.xlane.f32.xlu0 %v742_v2 }
 0x576   :  { %750 = vmax.xlane.f32.xlu1 %v745_v4 }
 0x601   :  { %v749_v5 = vpop.xlane.xlu0 %748 }
 0x602   :  { %v752_v7 = vsub.f32 %v742_v2, %v749_v5 }
 0x603   :  { %v751_v9 = vpop.xlane.xlu1 %750 }
 0x604   :  { %v757_v11 = vmul.f32 1.442695, %v752_v7  ;;  %v753_v12 = vsub.f32 %v745_v4, %v751_v9 }
 0x606   :  { %962 = vpow2.f32 %v757_v11  ;;  %v759_v13 = vmul.f32 1.442695, %v753_v12 }
 0x608   :  { %964 = vpow2.f32 %v759_v13 }
 0x610   :  { %v963_v15 = vpop.eup %962 }
 0x611   :  { %v761_v16 = vsel %vm756_vm1, %v963_v15, 0.0 }
 0x612   :  { %v965_v17 = vpop.eup %964  ;;  %763 = vadd.xlane.f32.xlu0 %v761_v16 }
 0x613   :  { %v762_v18 = vsel %vm756_vm1, %v965_v17, 0.0 }
 0x614   :  { %765 = vadd.xlane.f32.xlu1 %v762_v18 }
 0x69f   :  { %v764_v19 = vpop.xlane.xlu0 %763 }
 0x6a0   :  { %966 = vlog2.f32 %v764_v19 }
 0x6a1   :  { %v766_v20 = vpop.xlane.xlu1 %765 }
 0x6a2   :  { %968 = vlog2.f32 %v766_v20 }
 0x6aa   :  { %v967_v21 = vpop.eup %966 }
 0x6ab   :  { %v768_v22 = vmul.f32 0.6931472, %v967_v21 }
 0x6ac   :  { %v969_v23 = vpop.eup %968 }
 0x6ad   :  { %v771_v24 = vsub.f32 %v752_v7, %v768_v22  ;;  %v770_v25 = vmul.f32 0.6931472, %v969_v23 }
 0x6af   :  { %v772_v6 = vsub.f32 %v753_v12, %v770_v25  ;;  %v773_v26 = vsel %vm756_vm1, %v742_v2, %v771_v24 }
 0x6b0   :  { %775 = vst [vmem:[#allocation11] sm:$0xff] %v773_v26 }
 0x6b1   :  { %v774_v27 = vsel %vm756_vm1, %v745_v4, %v772_v6 }
 0x6b2   :  { %776 = vst [vmem:[#allocation11 + $0x8] sm:$0xff] %v774_v27 }
 0x6b3   :  { %1091 = shalt.err (!%p1088_p2)
}
 0x6b4   :  { %s1092_s9 = scalar_lea.hbm %s1259_s5, 256 }
 0x6b5   :  { %p1093_p3 = scmp.ne.s32.totalorder %s1259_s5, %s1092_s9  ;;  %p1096_p4 = scmp.lt.u32.totalorder %s1092_s9, %s1259_s5 }
 0x6b7   :  { %p1098_p5 = pnand %p1096_p4, %p1093_p3 }
 0x6b9   :  { %1101 = shalt.err (!%p1098_p5)
}
 0x6ba   :  { %788 = dma.vmem_to_hbm [thread:$0]  %s783_s6, 256, %s1259_s5, [#allocation4], %s1111_s28, %s1111_s28, %s1112_s29  }
 0x6bb   :  { %1108 = dma.done.wait [#allocation4], 256  }
 0x6bc   :  { %1109 = vsyncadd [#allocation4], 4294967040 }
 0x6bd   :  { %792 = vsyncpa [#allocation3], 1 }
 0x6be   :  { %793 = vsyncpa [#allocation6], 1 }
 0x6bf   :  { %794 = vsyncpa [#allocation9], 1 }
 0x6c0   :  { %795 = vsyncpa [#allocation4], 1 }

</bundles_post_ra>
